<compile_context>
chip_gen: v7x
topology: tpu7x:2x2x1
jax: 0.10.0
libtpu: 0.0.40
codegen_flags: <defaults>
</compile_context>

<pallas_src>
import jax
import jax.numpy as jnp
from jax import lax
from jax.experimental import pallas as pl
from jax.experimental.pallas import tpu as pltpu


def _round_up(x: int, m: int) -> int:
    return ((x + m - 1) // m) * m


def _pick_tile_rows(rows: int, tile_rows: int) -> int:
    """Row-tile heuristic: big tiles, >=2 grid steps when possible, and prefer a
    tile that divides `rows` exactly so no pad/slice round trip is needed."""
    tile_rows = max(8, _round_up(tile_rows, 8))
    if rows <= tile_rows:
        # Small problem: aim for >= 2 grid steps so a 2-TC part (v7x) can shard
        # the "parallel" row axis across both TensorCores; harmless on v5e/v6e.
        return max(8, _round_up(-(-rows // 2), 8))
    if rows % 8 == 0 and rows % tile_rows != 0:
        # Largest divisor of rows that is a multiple of 8 and not smaller than
        # half the requested tile -> skip the pad + slice HBM round trip.
        for cand in range(tile_rows, tile_rows // 2 - 1, -8):
            if rows % cand == 0:
                return cand
    return tile_rows


def _decoder_kernel_factory(use_residual: bool, d_model: int, eps: float):
    """Kernel body. `use_residual`, `d_model`, `eps` are compile-time constants;
    all traced values arrive via refs (nothing captured by closure)."""

    def kernel(z_ref, w1x_ref, b1x_ref, w2_ref, b2_ref, g_ref, bt_ref, out_ref):
        # First (fused) linear: z @ [W1 | Ws]  -- bf16 MXU operands, f32 accumulate.
        w1x = w1x_ref[...]                              # [L, D] or [L, 2D], narrow dtype
        z = z_ref[...].astype(w1x.dtype)                # [T, L]
        p = jnp.dot(z, w1x, preferred_element_type=jnp.float32) + b1x_ref[...]

        if use_residual:
            h = jnp.maximum(p[:, :d_model], 0.0)        # ReLU branch        [T, D] f32
            shortcut = p[:, d_model:]                   # shortcut Linear    [T, D] f32
        else:
            h = jnp.maximum(p, 0.0)

        # Second linear: h @ W2 -- the dominant 512x512xK matmul, bf16 operands.
        w2 = w2_ref[...]
        y = jnp.dot(h.astype(w2.dtype), w2,
                    preferred_element_type=jnp.float32) + b2_ref[...]

        # LayerNorm over d_model; two-pass stats in f32 (numerically stable).
        mean = jnp.mean(y, axis=-1, keepdims=True)
        cent = y - mean
        var = jnp.mean(cent * cent, axis=-1, keepdims=True)
        out = cent * lax.rsqrt(var + eps) * g_ref[...] + bt_ref[...]

        if use_residual:
            out = out + shortcut

        out_ref[...] = out.astype(out_ref.dtype)

    return kernel


def channel_decoder(z, params, *, use_residual=False, tile_rows=1024, eps=1e-5):
    """Pallas implementation of ChannelDecoder.forward.

    z: [batch, seq_len, latent_dim]
    params: w1 [L, D], b1 [D], w2 [D, D], b2 [D], gamma [D], beta [D]
            (+ ws [L, D], bs [D] if use_residual)
    """
    B, S, L = z.shape
    D = params["w1"].shape[1]
    out_dtype = z.dtype

    rows = B * S
    tr = _pick_tile_rows(rows, tile_rows)
    padded_rows = _round_up(rows, tr)
    num_tiles = padded_rows // tr

    z2d = z.reshape(rows, L)
    if padded_rows != rows:
        z2d = jnp.pad(z2d, ((0, padded_rows - rows), (0, 0)))

    def as_mxu(w):
        # Downcast wide (f32/f64) weights to bf16 once on the host; keep
        # already-narrow weights in their stored dtype (no redundant casts).
        return w.astype(jnp.bfloat16) if jnp.dtype(w.dtype).itemsize >= 4 else w

    if use_residual:
        # Fuse Linear(L, D) and the shortcut Linear(L, D) into one dot:
        # z @ [W1 | Ws], biases concatenated to match.
        w1x = jnp.concatenate([as_mxu(params["w1"]), as_mxu(params["ws"])], axis=1)
        b1x = jnp.concatenate([params["b1"], params["bs"]]).astype(jnp.float32).reshape(1, 2 * D)
    else:
        w1x = as_mxu(params["w1"])
        b1x = params["b1"].astype(jnp.float32).reshape(1, D)
    w2 = as_mxu(params["w2"])
    b2 = params["b2"].astype(jnp.float32).reshape(1, D)
    gamma = params["gamma"].astype(jnp.float32).reshape(1, D)
    beta = params["beta"].astype(jnp.float32).reshape(1, D)

    Dx = w1x.shape[1]
    resident = lambda i: (0, 0)   # parameters: same block every grid step
    in_specs = [
        pl.BlockSpec((tr, L), lambda i: (i, 0)),   # z row tile
        # TODO(synk): resident params are still double-buffered; pl.Buffered(1)
        # support is Mosaic-version dependent, so we accept the extra VMEM.
        pl.BlockSpec((L, Dx), resident),           # W1 (| Ws)
        pl.BlockSpec((1, Dx), resident),           # b1 (| bs)
        pl.BlockSpec((D, D), resident),            # W2
        pl.BlockSpec((1, D), resident),            # b2
        pl.BlockSpec((1, D), resident),            # gamma
        pl.BlockSpec((1, D), resident),            # beta
    ]
    operands = [z2d, w1x, b1x, w2, b2, gamma, beta]

    nbytes = lambda a: a.size * jnp.dtype(a.dtype).itemsize
    cost = pl.CostEstimate(
        flops=2 * padded_rows * (L * Dx + D * D),
        transcendentals=padded_rows,  # one rsqrt per row
        bytes_accessed=(nbytes(z2d)
                        + padded_rows * D * jnp.dtype(out_dtype).itemsize
                        + sum(nbytes(a) for a in operands[1:])),
    )

    kernel = _decoder_kernel_factory(bool(use_residual), int(D), float(eps))

    out2d = pl.pallas_call(
        kernel,
        out_shape=jax.ShapeDtypeStruct((padded_rows, D), out_dtype),
        grid=(num_tiles,),
        in_specs=in_specs,
        out_specs=pl.BlockSpec((tr, D), lambda i: (i, 0)),
        compiler_params=pltpu.CompilerParams(
            dimension_semantics=("parallel",),     # row tiles are independent
            vmem_limit_bytes=48 * 1024 * 1024,     # safe on v5e/v6e/v7x
        ),
        cost_estimate=cost,
    )(*operands)

    if padded_rows != rows:
        out2d = out2d[:rows]
    return out2d.reshape(B, S, D)


def channel_decoder_ref(z, params, *, use_residual=False, eps=1e-5,
                        mxu_dtype=jnp.bfloat16):
    """Pure-JAX reference. With mxu_dtype=bf16 it mirrors the kernel numerics
    (bf16 MXU operands, f32 accumulation, f32 LayerNorm stats); with f32 it is
    the exact module semantics."""
    f32 = jnp.float32
    zl = z.astype(mxu_dtype)
    h = jnp.maximum(
        jnp.dot(zl, params["w1"].astype(mxu_dtype), preferred_element_type=f32)
        + params["b1"].astype(f32), 0.0)
    y = jnp.dot(h.astype(mxu_dtype), params["w2"].astype(mxu_dtype),
                preferred_element_type=f32) + params["b2"].astype(f32)
    mean = jnp.mean(y, axis=-1, keepdims=True)
    var = jnp.mean(jnp.square(y - mean), axis=-1, keepdims=True)
    out = (y - mean) * lax.rsqrt(var + eps) * params["gamma"].astype(f32) \
        + params["beta"].astype(f32)
    if use_residual:
        out = out + jnp.dot(zl, params["ws"].astype(mxu_dtype),
                            preferred_element_type=f32) + params["bs"].astype(f32)
    return out.astype(z.dtype)


if __name__ == "__main__":
    key = jax.random.PRNGKey(0)
    B, S, L, D = 2, 8, 16, 512   # latent_dim=16, d_model=512 (module defaults)
    ks = jax.random.split(key, 8)

    z = jax.random.normal(ks[0], (B, S, L), dtype=jnp.float32)
    params = dict(
        w1=jax.random.normal(ks[1], (L, D), jnp.float32) * 0.1,
        b1=jax.random.normal(ks[2], (D,), jnp.float32) * 0.1,
        w2=jax.random.normal(ks[3], (D, D), jnp.float32) * 0.05,
        b2=jax.random.normal(ks[4], (D,), jnp.float32) * 0.1,
        gamma=1.0 + 0.1 * jax.random.normal(ks[5], (D,), jnp.float32),
        beta=0.1 * jax.random.normal(ks[6], (D,), jnp.float32),
        ws=jax.random.normal(ks[7], (L, D), jnp.float32) * 0.1,
        bs=jnp.zeros((D,), jnp.float32),
    )

    # Default path (use_residual=False)
    out = jax.block_until_ready(channel_decoder(z, params, use_residual=False))
    ref = channel_decoder_ref(z, params, use_residual=False)            # bf16-matched
    ref_f32 = channel_decoder_ref(z, params, use_residual=False,
                                  mxu_dtype=jnp.float32)                # exact module math
    assert out.shape == (B, S, D) and out.dtype == jnp.float32
    assert bool(jnp.all(jnp.isfinite(out)))
    assert jnp.allclose(out, ref, atol=1e-3, rtol=1e-3)
    assert jnp.allclose(out, ref_f32, atol=6e-2, rtol=6e-2)             # bf16-operand drift

    # Residual path (use_residual=True, fused z @ [W1 | Ws] dot)
    out_r = jax.block_until_ready(channel_decoder(z, params, use_residual=True))
    ref_r = channel_decoder_ref(z, params, use_residual=True)
    assert jnp.allclose(out_r, ref_r, atol=1e-3, rtol=1e-3)

    # Ragged row count (exercises the pad + masked-tail path)
    z_rag = jax.random.normal(ks[0], (3, 5, L), dtype=jnp.float32)
    out_g = jax.block_until_ready(channel_decoder(z_rag, params, use_residual=False))
    ref_g = channel_decoder_ref(z_rag, params, use_residual=False)
    assert out_g.shape == (3, 5, D) and bool(jnp.all(jnp.isfinite(out_g)))
    assert jnp.allclose(out_g, ref_g, atol=1e-3, rtol=1e-3)

    print("KERNEL_OK")
</pallas_src>

<mosaic_0001>
module attributes {stable_mosaic.version = 11 : i64} {
  func.func @kernel(%arg0: i32, %arg1: memref<8x16xf32, #tpu.memory_space<vmem>>, %arg2: memref<16x512xbf16, #tpu.memory_space<vmem>>, %arg3: memref<1x512xf32, #tpu.memory_space<vmem>>, %arg4: memref<512x512xbf16, #tpu.memory_space<vmem>>, %arg5: memref<1x512xf32, #tpu.memory_space<vmem>>, %arg6: memref<1x512xf32, #tpu.memory_space<vmem>>, %arg7: memref<1x512xf32, #tpu.memory_space<vmem>>, %arg8: memref<8x512xf32, #tpu.memory_space<vmem>>) attributes {dimension_semantics = [#tpu.dimension_semantics<parallel>], iteration_bounds = array<i64: 2>, scalar_prefetch = 0 : i64, scratch_operands = 0 : i64, tpu.core_type = #tpu.core_type<tc>, window_params = [{transform_indices = @transform_0, window_bounds = array<i64: 8, 16>}, {pipeline_mode = #tpu.pipeline_mode<synchronous>, transform_indices = @transform_1, window_bounds = array<i64: 16, 512>}, {pipeline_mode = #tpu.pipeline_mode<synchronous>, transform_indices = @transform_2, window_bounds = array<i64: 1, 512>}, {pipeline_mode = #tpu.pipeline_mode<synchronous>, transform_indices = @transform_3, window_bounds = array<i64: 512, 512>}, {pipeline_mode = #tpu.pipeline_mode<synchronous>, transform_indices = @transform_4, window_bounds = array<i64: 1, 512>}, {pipeline_mode = #tpu.pipeline_mode<synchronous>, transform_indices = @transform_5, window_bounds = array<i64: 1, 512>}, {pipeline_mode = #tpu.pipeline_mode<synchronous>, transform_indices = @transform_6, window_bounds = array<i64: 1, 512>}, {transform_indices = @transform_7, window_bounds = array<i64: 8, 512>}]} {
    %c0 = arith.constant 0 : index
    %c0_0 = arith.constant 0 : index
    %0 = vector.load %arg2[%c0, %c0_0] : memref<16x512xbf16, #tpu.memory_space<vmem>>, vector<16x512xbf16>
    %c0_1 = arith.constant 0 : index
    %c0_2 = arith.constant 0 : index
    %1 = vector.load %arg1[%c0_1, %c0_2] : memref<8x16xf32, #tpu.memory_space<vmem>>, vector<8x16xf32>
    %2 = arith.truncf %1 : vector<8x16xf32> to vector<8x16xbf16>
    %cst = arith.constant dense<0.000000e+00> : vector<8x512xf32>
    %3 = tpu.matmul %2, %0, %cst {dimension_numbers = #tpu.dot_dimension_numbers<[1], [0], [0], [1], [0, 0, 1, 1], [], []>} : vector<8x16xbf16>, vector<16x512xbf16>, vector<8x512xf32> -> vector<8x512xf32>
    %c0_3 = arith.constant 0 : index
    %c0_4 = arith.constant 0 : index
    %4 = vector.load %arg3[%c0_3, %c0_4] : memref<1x512xf32, #tpu.memory_space<vmem>>, vector<1x512xf32>
    %5 = vector.broadcast %4 : vector<1x512xf32> to vector<8x512xf32>
    %6 = arith.addf %3, %5 : vector<8x512xf32>
    %cst_5 = arith.constant 0.000000e+00 : f32
    %7 = vector.broadcast %cst_5 : f32 to vector<8x512xf32>
    %8 = arith.maximumf %6, %7 : vector<8x512xf32>
    %c0_6 = arith.constant 0 : index
    %c0_7 = arith.constant 0 : index
    %9 = vector.load %arg4[%c0_6, %c0_7] : memref<512x512xbf16, #tpu.memory_space<vmem>>, vector<512x512xbf16>
    %10 = arith.truncf %8 : vector<8x512xf32> to vector<8x512xbf16>
    %cst_8 = arith.constant dense<0.000000e+00> : vector<8x512xf32>
    %11 = tpu.matmul %10, %9, %cst_8 {dimension_numbers = #tpu.dot_dimension_numbers<[1], [0], [0], [1], [0, 0, 1, 1], [], []>} : vector<8x512xbf16>, vector<512x512xbf16>, vector<8x512xf32> -> vector<8x512xf32>
    %c0_9 = arith.constant 0 : index
    %c0_10 = arith.constant 0 : index
    %12 = vector.load %arg5[%c0_9, %c0_10] : memref<1x512xf32, #tpu.memory_space<vmem>>, vector<1x512xf32>
    %13 = vector.broadcast %12 : vector<1x512xf32> to vector<8x512xf32>
    %14 = arith.addf %11, %13 : vector<8x512xf32>
    %cst_11 = arith.constant dense<0.000000e+00> : vector<8xf32>
    %15 = vector.multi_reduction <add>, %14, %cst_11 [1] : vector<8x512xf32> to vector<8xf32>
    %16 = vector.shape_cast %15 : vector<8xf32> to vector<8x1xf32>
    %cst_12 = arith.constant 5.120000e+02 : f32
    %17 = vector.broadcast %cst_12 : f32 to vector<8x1xf32>
    %18 = arith.divf %16, %17 : vector<8x1xf32>
    %19 = vector.broadcast %18 : vector<8x1xf32> to vector<8x512xf32>
    %20 = arith.subf %14, %19 : vector<8x512xf32>
    %21 = arith.mulf %20, %20 : vector<8x512xf32>
    %cst_13 = arith.constant dense<0.000000e+00> : vector<8xf32>
    %22 = vector.multi_reduction <add>, %21, %cst_13 [1] : vector<8x512xf32> to vector<8xf32>
    %23 = vector.shape_cast %22 : vector<8xf32> to vector<8x1xf32>
    %cst_14 = arith.constant 5.120000e+02 : f32
    %24 = vector.broadcast %cst_14 : f32 to vector<8x1xf32>
    %25 = arith.divf %23, %24 : vector<8x1xf32>
    %cst_15 = arith.constant 9.99999974E-6 : f32
    %26 = vector.broadcast %cst_15 : f32 to vector<8x1xf32>
    %27 = arith.addf %25, %26 : vector<8x1xf32>
    %28 = math.rsqrt %27 : vector<8x1xf32>
    %29 = vector.broadcast %28 : vector<8x1xf32> to vector<8x512xf32>
    %30 = arith.mulf %20, %29 : vector<8x512xf32>
    %c0_16 = arith.constant 0 : index
    %c0_17 = arith.constant 0 : index
    %31 = vector.load %arg6[%c0_16, %c0_17] : memref<1x512xf32, #tpu.memory_space<vmem>>, vector<1x512xf32>
    %32 = vector.broadcast %31 : vector<1x512xf32> to vector<8x512xf32>
    %33 = arith.mulf %30, %32 : vector<8x512xf32>
    %c0_18 = arith.constant 0 : index
    %c0_19 = arith.constant 0 : index
    %34 = vector.load %arg7[%c0_18, %c0_19] : memref<1x512xf32, #tpu.memory_space<vmem>>, vector<1x512xf32>
    %35 = vector.broadcast %34 : vector<1x512xf32> to vector<8x512xf32>
    %36 = arith.addf %33, %35 : vector<8x512xf32>
    %c0_20 = arith.constant 0 : index
    %c0_21 = arith.constant 0 : index
    %37 = vector.load %arg8[%c0_20, %c0_21] : memref<8x512xf32, #tpu.memory_space<vmem>>, vector<8x512xf32>
    tpu.vector_store %arg8[%c0_20, %c0_21], %36 {strides = array<i32>} : memref<8x512xf32, #tpu.memory_space<vmem>>, vector<8x512xf32>,
    return
  }
  func.func @transform_0(%arg0: i32) -> (i32, i32) {
    %c0_i32 = arith.constant 0 : i32
    %c0_i32_0 = arith.constant 0 : i32
    return %arg0, %c0_i32 : i32, i32
  }
  func.func @transform_1(%arg0: i32) -> (i32, i32) {
    %c0_i32 = arith.constant 0 : i32
    %c0_i32_0 = arith.constant 0 : i32
    %c0_i32_1 = arith.constant 0 : i32
    return %c0_i32, %c0_i32_0 : i32, i32
  }
  func.func @transform_2(%arg0: i32) -> (i32, i32) {
    %c0_i32 = arith.constant 0 : i32
    %c0_i32_0 = arith.constant 0 : i32
    %c0_i32_1 = arith.constant 0 : i32
    return %c0_i32, %c0_i32_0 : i32, i32
  }
  func.func @transform_3(%arg0: i32) -> (i32, i32) {
    %c0_i32 = arith.constant 0 : i32
    %c0_i32_0 = arith.constant 0 : i32
    %c0_i32_1 = arith.constant 0 : i32
    return %c0_i32, %c0_i32_0 : i32, i32
  }
  func.func @transform_4(%arg0: i32) -> (i32, i32) {
    %c0_i32 = arith.constant 0 : i32
    %c0_i32_0 = arith.constant 0 : i32
    %c0_i32_1 = arith.constant 0 : i32
    return %c0_i32, %c0_i32_0 : i32, i32
  }
  func.func @transform_5(%arg0: i32) -> (i32, i32) {
    %c0_i32 = arith.constant 0 : i32
    %c0_i32_0 = arith.constant 0 : i32
    %c0_i32_1 = arith.constant 0 : i32
    return %c0_i32, %c0_i32_0 : i32, i32
  }
  func.func @transform_6(%arg0: i32) -> (i32, i32) {
    %c0_i32 = arith.constant 0 : i32
    %c0_i32_0 = arith.constant 0 : i32
    %c0_i32_1 = arith.constant 0 : i32
    return %c0_i32, %c0_i32_0 : i32, i32
  }
  func.func @transform_7(%arg0: i32) -> (i32, i32) {
    %c0_i32 = arith.constant 0 : i32
    %c0_i32_0 = arith.constant 0 : i32
    return %arg0, %c0_i32 : i32, i32
  }
}

</mosaic_0001>

<bundles_post_ra>
// kernel: tpu_custom_call.1
= control target key start
LH: loop header
LB: loop body
LE: loop exit
PB: predicated region body
PF: predicated region fallthrough
CT: control target
= control target key end

     0   :  { %12 = vsyncpa [#allocation3], 0  ;;  %s2527_s0 = inlined_call_operand.hbm [shape: f32[16,16], index: 0, kind: input, shape index: {}]   ;;  %s2528_s1 = inlined_call_operand.hbm [shape: bf16[16,512], index: 1, kind: input, shape index: {}]   ;;  %s2529_s2 = inlined_call_operand.vmem [shape: f32[1,512], index: 2, kind: input, shape index: {}]   ;;  %s2530_s3 = inlined_call_operand.hbm [shape: bf16[512,512], index: 3, kind: input, shape index: {}]   ;;  %s2531_s4 = inlined_call_operand.vmem [shape: f32[1,512], index: 4, kind: input, shape index: {}]   ;;  %s2532_s5 = inlined_call_operand.vmem [shape: f32[1,512], index: 5, kind: input, shape index: {}]   ;;  %s2533_s6 = inlined_call_operand.vmem [shape: f32[1,512], index: 6, kind: input, shape index: {}]   ;;  %s2534_s7 = inlined_call_operand.hbm [shape: f32[16,512], index: 7, kind: output, shape index: {}]  }
   0x1   :  { %14 = vsyncpa [#allocation3 + $0x1], 0 }
   0x2   :  { %15 = vsyncpa [#allocation6], 0 }
   0x3   :  { %16 = vsyncpa [#allocation4], 0 }
   0x4   :  { %18 = vsyncpa [#allocation4 + $0x1], 0  ;;  %s2246_s24 = smov 0   ;;  %s2248_s25 = smov 0  }
   0x5   :  { %s2250_s26 = smov 0   ;;  %s2252_s27 = smov 0  }
   0x6 LB: > { %s2267_s28 = sadd.s32 4294967295, %s2197_s27   ;;  %s1607_s29 = sadd.s32 4294967294, %s2197_s27   ;;  %s2197_s27 = sphi %s2252_s27, %s2554_s27   ;;  %s2193_s26 = sphi %s2250_s26, %s2553_s26   ;;  %s2189_s25 = sphi %s2248_s25, %s2552_s25   ;;  %s2185_s24 = sphi %s2246_s24, %s2551_s24  }
   0x7   : > { %p44_p0 = scmp.ne.s32.totalorder %s2189_s25, %s2185_s24  ;;  %p2535_p1 = scmp.eq.s32.totalorder %s2267_s28, 0 }
   0x8   : > { %p200_p3 = scmp.eq.s32.totalorder %s1607_s29, 1  ;;  %p1608_p5 = scmp.ge.s32.totalorder %s2197_s27, 1 }
   0x9   : > { %p2276_p4 = por %p2535_p1, %p44_p0  ;;  %p207_p7 = scmp.lt.s32.totalorder %s2197_s27, 3 }
   0xa   : > { %p2281_p6 = por %p200_p3, %p44_p0  ;;  %s2199_s10 = smov [#allocation5]  }
   0xb   : > { %s2538_s30 = scalar_select %p2276_p4, 1, 0 }
   0xc   : > { %s2539_s8 = scalar_select %p2281_p6, 1, 0 }
   0xd   : > { %p2286_p8 = pnand %p1608_p5, %p207_p7  ;;  %s219_s11 = sshll.u32 %s2199_s10, 4  ;;  %s2290_s11 = int_to_ptr.vmem [resolvable:$true] %s219_s11 }
   0xe   : > { %s2200_s13 = smov [#allocation7]   ;;  %s2041_s17 = scalar_lea.hbm %s2528_s1, 512 }
   0xf   : > { %p1783_p9 = pneg %p2286_p8  ;;  %s235_s14 = sshll.u32 %s2200_s13, 4  ;;  %s2301_s14 = int_to_ptr.vmem [resolvable:$true] %s235_s14 }
  0x10   : > { %p2042_p12 = scmp.ne.s32.totalorder %s2528_s1, %s2041_s17  ;;  %p2048_p5 = scmp.lt.u32.totalorder %s2041_s17, %s2528_s1 }
  0x11   : > { %p2297_p11 = pnand %p1783_p9, %p2535_p1 }
  0x13   : > { %p2043_p13 = pneg %p2297_p11 }
  0x15   : > { %p2044_p0 = pnand %p2043_p13, %p2042_p12 }
  0x17   : > { %p2045_p3 = pneg %p2044_p0 }
  0x19   : > { %p2050_p7 = pnand %p2048_p5, %p2045_p3 }
  0x1b   : > { %2053 = shalt.err (!%p2050_p7)
}
  0x1c   : > { %s2054_s22 = scalar_lea.vmem %s2290_s11, 512  ;;  %p2062_p2 = scmp.lt.s32.totalorder %s2290_s11, %s2290_s11 }
  0x1d   : > { %p2055_p9 = scmp.ne.s32.totalorder %s2290_s11, %s2054_s22  ;;  %p2063_p12 = scmp.lt.s32.totalorder %s2054_s22, %s2054_s22 }
  0x1f   : > { %p2057_p10 = pnand %p2055_p9, %p2043_p13  ;;  %p2064_p0 = por %p2063_p12, %p2062_p2 }
  0x21   : > { %p2058_p1 = pneg %p2057_p10 }
  0x23   : > { %p2065_p6 = pnand %p2064_p0, %p2058_p1 }
  0x25   : > { %2068 = shalt.err (!%p2065_p6)
}
  0x26   : > { %s2201_s23 = smov 256   ;;  %s2202_s29 = smov 16  }
  0x27   : > { %1786 = dma.hbm_to_vmem [thread:$0]  (!%p2297_p11), %s2528_s1, 512, %s2290_s11, [#allocation6], %s2201_s23, %s2201_s23, %s2202_s29  }
  0x28   : > { %s2069_s17 = scalar_lea.hbm %s2530_s3, 16384 }
  0x29   : > { %p2070_p2 = scmp.ne.s32.totalorder %s2530_s3, %s2069_s17  ;;  %p2076_p10 = scmp.lt.u32.totalorder %s2069_s17, %s2530_s3 }
  0x2b   : > { %p2072_p1 = pnand %p2070_p2, %p2043_p13 }
  0x2d   : > { %p2073_p6 = pneg %p2072_p1 }
  0x2f   : > { %p2078_p3 = pnand %p2076_p10, %p2073_p6 }
  0x31   : > { %2081 = shalt.err (!%p2078_p3)
}
  0x32   : > { %s2082_s11 = scalar_lea.vmem %s2301_s14, 16384  ;;  %p2090_p12 = scmp.lt.s32.totalorder %s2301_s14, %s2301_s14 }
  0x33   : > { %p2083_p5 = scmp.ne.s32.totalorder %s2301_s14, %s2082_s11  ;;  %p2091_p0 = scmp.lt.s32.totalorder %s2082_s11, %s2082_s11 }
  0x35   : > { %p2085_p7 = pnand %p2083_p5, %p2043_p13  ;;  %p2092_p2 = por %p2091_p0, %p2090_p12 }
  0x37   : > { %p2086_p9 = pneg %p2085_p7 }
  0x39   : > { %p2093_p1 = pnand %p2092_p2, %p2086_p9 }
  0x3b   : > { %2096 = shalt.err (!%p2093_p1)
}
  0x3c   : > { %1789 = dma.hbm_to_vmem [thread:$0]  (!%p2297_p11), %s2530_s3, 16384, %s2301_s14, [#allocation6], %s2201_s23, %s2201_s23, %s2202_s29  }
  0x3d   : > { %s2356_s13 = sadd.s32 1, %s2197_s27   ;;  %s31_s12 = sadd.s32 1, %s2193_s26 }
  0x3e   : > { %s28_s15 = ssub.s32 %s2197_s27, %s2356_s13  ;;  %p38_p13 = scmp.ne.s32.totalorder %s2193_s26, %s2189_s25 }
  0x3f   : > { %p29_p6 = scmp.eq.s32.totalorder %s28_s15, 0  ;;  %p39_p10 = scmp.eq.s32.totalorder %s2197_s27, 0 }
  0x40   : > { %p2542_p3 = scmp.eq.s32.totalorder %s2267_s28, 1  ;;  %p1800_p7 = scmp.lt.s32.totalorder %s2197_s27, 2 }
  0x41   : > { %s2372_s17 = scalar_select %p29_p6, %s2193_s26, %s31_s12  }
  0x42   : > { %p2366_p5 = por %p2542_p3, %p38_p13  ;;  %p40_p9 = por %p39_p10, %p38_p13 }
  0x43   : > { %s258_s18 = sand.u32 1, %s2193_s26   ;;  %s1613_s14 = sshll.u32 %s2197_s27, 7 }
  0x44   : > { %s2543_s16 = scalar_select %p2366_p5, 1, 0 }
  0x45   : > { %s1612_s19 = sshll.u32 %s258_s18, 3  ;;  %s2379_s20 = scalar_lea.hbm %s2527_s0, %s1613_s14 }
  0x46   : > { %s262_s21 = scalar_lea.vmem [#allocation2], %s1612_s19  ;;  %p2383_p11 = pnand %p1800_p7, %p40_p9 }
  0x47   : > { %s269_s11 = sshll.u32 %s262_s21, 4  ;;  %s259_s10 = scalar_lea.sflag [#allocation3], %s258_s18  ;;  %s2381_s11 = int_to_ptr.vmem [resolvable:$true] %s269_s11 }
  0x48   : > { %s2097_s12 = scalar_lea.hbm %s2379_s20, 128  ;;  %p2099_p0 = pneg %p2383_p11 }
  0x49   : > { %p2098_p12 = scmp.ne.s32.totalorder %s2379_s20, %s2097_s12  ;;  %s2102_s14 = scalar_lea.hbm %s2527_s0, 256 }
  0x4a   : > { %p2103_p13 = scmp.lt.u32.totalorder %s2379_s20, %s2527_s0  ;;  %p2104_p6 = scmp.lt.u32.totalorder %s2102_s14, %s2097_s12 }
  0x4b   : > { %p2100_p2 = pnand %p2099_p0, %p2098_p12  ;;  %p2106_p3 = scmp.lt.u32.totalorder %s2097_s12, %s2379_s20 }
  0x4c   : > { %p2105_p10 = por %p2104_p6, %p2103_p13 }
  0x4d   : > { %p2101_p1 = pneg %p2100_p2 }
  0x4e   : > { %p2107_p7 = por %p2106_p3, %p2105_p10 }
  0x50   : > { %p2108_p9 = pnand %p2107_p7, %p2101_p1 }
  0x52   : > { %2111 = shalt.err (!%p2108_p9)
}
  0x53   : > { %s2112_s18 = scalar_lea.vmem %s2381_s11, 128  ;;  %s2203_s21 = smov [#allocation2]  }
  0x54   : > { %p2113_p12 = scmp.ne.s32.totalorder %s2381_s11, %s2112_s18  ;;  %s2117_s15 = sshll.u32 %s2203_s21, 4  ;;  %s2118_s15 = int_to_ptr.vmem [resolvable:$false] %s2117_s15 }
  0x55   : > { %s2119_s19 = scalar_lea.vmem %s2118_s15, 256  ;;  %p2120_p4 = scmp.lt.s32.totalorder %s2381_s11, %s2118_s15 }
  0x56   : > { %p2115_p2 = pnand %p2113_p12, %p2099_p0  ;;  %p2121_p13 = scmp.lt.s32.totalorder %s2119_s19, %s2112_s18 }
  0x58   : > { %p2116_p5 = pneg %p2115_p2  ;;  %p2122_p6 = por %p2121_p13, %p2120_p4 }
  0x5a   : > { %p2123_p10 = pnand %p2122_p6, %p2116_p5 }
  0x5c   : > { %2126 = shalt.err (!%p2123_p10)
}
  0x5d   : > { %1793 = dma.hbm_to_vmem [thread:$0]  (!%p2383_p11), %s2379_s20, 128, %s2381_s11, %s259_s10  }
  0x5e   : > { %278 = sbr.rel (%p2286_p8) target bundleno = 948 (0x3b4), region = 48  ;;  %s2415_s12 = sand.u32 (!%p2286_p8), 1, %s2189_s25  }
  0x5f   : > { %s1615_s14 = sshll.u32 (!%p2286_p8), %s2415_s12, 3  ;;  %s281_s23 = scalar_lea.sflag (!%p2286_p8), [#allocation3], %s2415_s12 }
  0x60   : > { %s284_s29 = scalar_lea.vmem (!%p2286_p8), [#allocation2], %s1615_s14  ;;  %p2545_p4 = scmp.ne.s32.totalorder (!%p2286_p8), %s2538_s30, 0 }
  0x65   : > { %2172 = dma.done.wait (%p2545_p4), %s281_s23, 128  }
  0x66   : > { %2174 = vsyncadd (%p2545_p4), %s281_s23, 4294967168  ;;  %p2546_p5 = scmp.eq.s32.totalorder %s2267_s28, 0 }
  0x68   : > { %2176 = dma.done.wait (%p2546_p5), [#allocation6], 16896   ;;  %p2547_p11 = pmov %p2546_p5 }
  0x69   : > { %v2204_v0 = vmov 0   ;;  %v1841_v1 = vld [vmem:[#allocation5 + $0x4] ss:$16 sps:$4 sm:$0xff]   ;;  %v1843_v2 = vld [vmem:[#allocation5] ss:$16 sps:$4 sm:$0xff]   ;;  %vm372_vm0 = vcmask 130048  }
  0x6a   : > { %2178 = vsyncadd (%p2547_p11), [#allocation6], 4294950400  ;;  %408 = vmatprep.mubr.bf16.mxu0 %v2204_v0  ;;  %449 = vmatprep.mubr.bf16.mxu1 %v2204_v0  ;;  %v328_v3 = vld [vmem:[%s284_s29] sm:$0xff]  ;;  %s1618_s18 = sshll.u32 %s2415_s12, 5  ;;  %s1758_s19 = sshll.u32 %s2267_s28, 9 }
  0x6b   : > { %376 = vmatprep.subr.bf16.mxu0 %v1841_v1  ;;  %v329_v4 = vpack.c.bf16 %v328_v3, %v328_v3  ;;  %v1844_v5 = vld [vmem:[#allocation5 + $0xc] ss:$16 sps:$4 sm:$0xff]   ;;  %v1846_v6 = vld [vmem:[#allocation5 + $0x8] ss:$16 sps:$4 sm:$0xff]   ;;  %v1847_v7 = vld [vmem:[#allocation7] ss:$16 sps:$4 sm:$0xff]   ;;  %s2483_s9 = scalar_lea.hbm %s2534_s7, %s1758_s19 }
  0x6c   : > { %377 = vmatpush1.bf16.msra.mxu0 %v1843_v2  ;;  %417 = vmatprep.subr.bf16.mxu1 %v1844_v5  ;;  %v1849_v8 = vld [vmem:[#allocation7 + $0x4] ss:$16 sps:$4 sm:$0xff]   ;;  %v1850_v9 = vld [vmem:[#allocation7 + $0x8] ss:$16 sps:$4 sm:$0xff]   ;;  %v1852_v10 = vld [vmem:[#allocation7 + $0xc] ss:$16 sps:$4 sm:$0xff]  }
  0x6d   : > { %418 = vmatpush1.bf16.msra.mxu1 %v1846_v6  ;;  %1256 = vmatprep.subr.bf16.mxu0 %v1849_v8  ;;  %v1855_v11 = vld [vmem:[#allocation7 + $0x24] ss:$16 sps:$4 sm:$0xff]   ;;  %v1853_v12 = vld [vmem:[#allocation7 + $0x20] ss:$16 sps:$4 sm:$0xff]   ;;  %v1858_v13 = vld [vmem:[#allocation7 + $0x2c] ss:$16 sps:$4 sm:$0xff]  }
  0x6e   : > { %1338 = vmatprep.subr.bf16.mxu1 %v1852_v10  ;;  %v1856_v14 = vld [vmem:[#allocation7 + $0x28] ss:$16 sps:$4 sm:$0xff]   ;;  %v1861_v15 = vld [vmem:[#allocation7 + $0x44] ss:$16 sps:$4 sm:$0xff]   ;;  %v1864_v16 = vld [vmem:[#allocation7 + $0x4c] ss:$16 sps:$4 sm:$0xff]  }
  0x6f   : > { %1623 = vmatmul.mubr.msk.bf16.vlgmr.msra.gmra.mrb[0].mxu0 %vm372_vm0, %v329_v4  ;;  %v1859_v17 = vld [vmem:[#allocation7 + $0x40] ss:$16 sps:$4 sm:$0xff]   ;;  %v1867_v18 = vld [vmem:[#allocation7 + $0x64] ss:$16 sps:$4 sm:$0xff]   ;;  %v1862_v19 = vld [vmem:[#allocation7 + $0x48] ss:$16 sps:$4 sm:$0xff]  }
  0x70   : > { %1257 = vmatpush1.bf16.msra.mxu0 %v1847_v7  ;;  %1624 = vmatmul.mubr.msk.bf16.vlgmr.msra.gmra.mrb[0].mxu1 %vm372_vm0, %v329_v4  ;;  %v1870_v20 = vld [vmem:[#allocation7 + $0x6c] ss:$16 sps:$4 sm:$0xff]   ;;  %v1865_v21 = vld [vmem:[#allocation7 + $0x60] ss:$16 sps:$4 sm:$0xff]   ;;  %v1873_v22 = vld [vmem:[#allocation7 + $0x84] ss:$16 sps:$4 sm:$0xff]  }
  0x71   : > { %1258 = vmatprep.subr.bf16.mxu0 %v1855_v11  ;;  %1339 = vmatpush1.bf16.msra.mxu1 %v1850_v9  ;;  %v1868_v23 = vld [vmem:[#allocation7 + $0x68] ss:$16 sps:$4 sm:$0xff]   ;;  %v1876_v24 = vld [vmem:[#allocation7 + $0x8c] ss:$16 sps:$4 sm:$0xff]   ;;  %v1871_v25 = vld [vmem:[#allocation7 + $0x80] ss:$16 sps:$4 sm:$0xff]   ;;  %v332_v9 = vlaneseq }
  0x72   : > { %1340 = vmatprep.subr.bf16.mxu1 %v1858_v13  ;;  %v1879_v26 = vld [vmem:[#allocation7 + $0xa4] ss:$16 sps:$4 sm:$0xff]   ;;  %v1874_v27 = vld [vmem:[#allocation7 + $0x88] ss:$16 sps:$4 sm:$0xff]   ;;  %v1882_v28 = vld [vmem:[#allocation7 + $0xac] ss:$16 sps:$4 sm:$0xff]  }
  0x73   : > { %v1877_v29 = vld [vmem:[#allocation7 + $0xa0] ss:$16 sps:$4 sm:$0xff]   ;;  %v1885_v30 = vld [vmem:[#allocation7 + $0xc4] ss:$16 sps:$4 sm:$0xff]   ;;  %v1880_v31 = vld [vmem:[#allocation7 + $0xa8] ss:$16 sps:$4 sm:$0xff]  }
  0x74   : > { %1259 = vmatpush1.bf16.msra.mxu0 %v1853_v12  ;;  %v1888_v32 = vld [vmem:[#allocation7 + $0xcc] ss:$16 sps:$4 sm:$0xff]   ;;  %v1883_v33 = vld [vmem:[#allocation7 + $0xc0] ss:$16 sps:$4 sm:$0xff]   ;;  %v1891_v34 = vld [vmem:[#allocation7 + $0xe4] ss:$16 sps:$4 sm:$0xff]  }
  0x75   : > { %1260 = vmatprep.subr.bf16.mxu0 %v1861_v15  ;;  %1341 = vmatpush1.bf16.msra.mxu1 %v1856_v14  ;;  %v1886_v35 = vld [vmem:[#allocation7 + $0xc8] ss:$16 sps:$4 sm:$0xff]   ;;  %v1894_v36 = vld [vmem:[#allocation7 + $0xec] ss:$16 sps:$4 sm:$0xff]   ;;  %v1889_v37 = vld [vmem:[#allocation7 + $0xe0] ss:$16 sps:$4 sm:$0xff]  }
  0x76   : > { %1342 = vmatprep.subr.bf16.mxu1 %v1864_v16  ;;  %v1897_v38 = vld [vmem:[#allocation7 + $0x104] ss:$16 sps:$4 sm:$0xff]   ;;  %v1892_v39 = vld [vmem:[#allocation7 + $0xe8] ss:$16 sps:$4 sm:$0xff]   ;;  %v1900_v40 = vld [vmem:[#allocation7 + $0x10c] ss:$16 sps:$4 sm:$0xff]  }
  0x77   : > { %v1895_v41 = vld [vmem:[#allocation7 + $0x100] ss:$16 sps:$4 sm:$0xff]   ;;  %v1903_v42 = vld [vmem:[#allocation7 + $0x124] ss:$16 sps:$4 sm:$0xff]   ;;  %v1898_v43 = vld [vmem:[#allocation7 + $0x108] ss:$16 sps:$4 sm:$0xff]  }
  0x78   : > { %1261 = vmatpush1.bf16.msra.mxu0 %v1859_v17  ;;  %v1901_v44 = vld [vmem:[#allocation7 + $0x120] ss:$16 sps:$4 sm:$0xff]   ;;  %v1906_v45 = vld [vmem:[#allocation7 + $0x12c] ss:$16 sps:$4 sm:$0xff]   ;;  %v1904_v46 = vld [vmem:[#allocation7 + $0x128] ss:$16 sps:$4 sm:$0xff]  }
  0x79   : > { %1262 = vmatprep.subr.bf16.mxu0 %v1867_v18  ;;  %1343 = vmatpush1.bf16.msra.mxu1 %v1862_v19  ;;  %v1909_v47 = vld [vmem:[#allocation7 + $0x144] ss:$16 sps:$4 sm:$0xff]   ;;  %v1912_v48 = vld [vmem:[#allocation7 + $0x14c] ss:$16 sps:$4 sm:$0xff]   ;;  %v1907_v49 = vld [vmem:[#allocation7 + $0x140] ss:$16 sps:$4 sm:$0xff]  }
  0x7a   : > { %1344 = vmatprep.subr.bf16.mxu1 %v1870_v20  ;;  %v1915_v50 = vld [vmem:[#allocation7 + $0x164] ss:$16 sps:$4 sm:$0xff]   ;;  %v1910_v51 = vld [vmem:[#allocation7 + $0x148] ss:$16 sps:$4 sm:$0xff]   ;;  %v1918_v52 = vld [vmem:[#allocation7 + $0x16c] ss:$16 sps:$4 sm:$0xff]  }
  0x7b   : > { %v1913_v53 = vld [vmem:[#allocation7 + $0x160] ss:$16 sps:$4 sm:$0xff]   ;;  %v1921_v54 = vld [vmem:[#allocation7 + $0x184] ss:$16 sps:$4 sm:$0xff]   ;;  %v1916_v55 = vld [vmem:[#allocation7 + $0x168] ss:$16 sps:$4 sm:$0xff]  }
  0x7c   : > { %1263 = vmatpush1.bf16.msra.mxu0 %v1865_v21  ;;  %v1924_v56 = vld [vmem:[#allocation7 + $0x18c] ss:$16 sps:$4 sm:$0xff]   ;;  %v1919_v57 = vld [vmem:[#allocation7 + $0x180] ss:$16 sps:$4 sm:$0xff]   ;;  %v1927_v58 = vld [vmem:[#allocation7 + $0x1a4] ss:$16 sps:$4 sm:$0xff]  }
  0x7d   : > { %1264 = vmatprep.subr.bf16.mxu0 %v1873_v22  ;;  %1345 = vmatpush1.bf16.msra.mxu1 %v1868_v23  ;;  %v1922_v59 = vld [vmem:[#allocation7 + $0x188] ss:$16 sps:$4 sm:$0xff]   ;;  %v1930_v60 = vld [vmem:[#allocation7 + $0x1ac] ss:$16 sps:$4 sm:$0xff]   ;;  %v1925_v61 = vld [vmem:[#allocation7 + $0x1a0] ss:$16 sps:$4 sm:$0xff]  }
  0x7e   : > { %1346 = vmatprep.subr.bf16.mxu1 %v1876_v24  ;;  %v1928_v62 = vld [vmem:[#allocation7 + $0x1a8] ss:$16 sps:$4 sm:$0xff]   ;;  %v1933_v63 = vld [vmem:[#allocation7 + $0x1c4] ss:$16 sps:$4 sm:$0xff]   ;;  %v1936_v0 = vld [vmem:[#allocation7 + $0x1cc] ss:$16 sps:$4 sm:$0xff]  }
  0x7f   : > { %v1931_v1 = vld [vmem:[#allocation7 + $0x1c0] ss:$16 sps:$4 sm:$0xff]   ;;  %v1934_v2 = vld [vmem:[#allocation7 + $0x1c8] ss:$16 sps:$4 sm:$0xff]   ;;  %v1939_v3 = vld [vmem:[#allocation7 + $0x1e4] ss:$16 sps:$4 sm:$0xff]  }
  0x80   : > { %1265 = vmatpush1.bf16.msra.mxu0 %v1871_v25  ;;  %v1942_v4 = vld [vmem:[#allocation7 + $0x1ec] ss:$16 sps:$4 sm:$0xff]   ;;  %v1937_v5 = vld [vmem:[#allocation7 + $0x1e0] ss:$16 sps:$4 sm:$0xff]   ;;  %v1940_v6 = vld [vmem:[#allocation7 + $0x1e8] ss:$16 sps:$4 sm:$0xff]  }
  0x81   : > { %1266 = vmatprep.subr.bf16.mxu0 %v1879_v26  ;;  %1347 = vmatpush1.bf16.msra.mxu1 %v1874_v27  ;;  %v1945_v7 = vld [vmem:[#allocation7 + $0x204] ss:$16 sps:$4 sm:$0xff]   ;;  %v1948_v8 = vld [vmem:[#allocation7 + $0x20c] ss:$16 sps:$4 sm:$0xff]   ;;  %v2427_v10 = vshrl.u32 %v332_v9, 7  ;;  %s322_s14 = scalar_lea.vmem [#allocation8], %s1618_s18 }
  0x82   : > { %1348 = vmatprep.subr.bf16.mxu1 %v1882_v28  ;;  %v2435_v12 = vld [vmem:[%s2529_s2] sm:$0xf]  ;;  %v2005_v9 = vld [vmem:[#allocation7 + $0x344] ss:$16 sps:$4 sm:$0xff]   ;;  %s1518_s23 = sshll.u32 %s322_s14, 4  ;;  %s1504_s28 = scalar_lea.sflag [#allocation4], %s2415_s12  ;;  %s2485_s23 = int_to_ptr.vmem [resolvable:$true] %s1518_s23 }
  0x83   : > { %v2430_v11 = vsub.s32 0, %v2427_v10  ;;  %v2438_v13 = vsub.s32 1, %v2427_v10  ;;  %v2441_v14 = vsub.s32 3, %v2427_v10  ;;  %s2127_s20 = scalar_lea.vmem %s2485_s23, 512  ;;  %p2548_p0 = scmp.ne.s32.totalorder %s2543_s16, 0 }
  0x84   : > { %1267 = vmatpush1.bf16.msra.mxu0 %v1877_v29  ;;  %p2128_p8 = scmp.ne.s32.totalorder %s2485_s23, %s2127_s20  ;;  %s2205_s11 = smov [#allocation8]  }
  0x85   : > { %1268 = vmatprep.subr.bf16.mxu0 %v1885_v30  ;;  %1349 = vmatpush1.bf16.msra.mxu1 %v1880_v31  ;;  %v335_v15 = vrot.slane %v2435_v12, %v2430_v11  ;;  %v339_v16 = vrot.slane %v2435_v12, %v2438_v13  ;;  %v347_v18 = vrot.slane %v2435_v12, %v2441_v14  ;;  %s2131_s22 = sshll.u32 %s2205_s11, 4  ;;  %s2132_s22 = int_to_ptr.vmem [resolvable:$false] %s2131_s22 }
  0x86   : > { %1350 = vmatprep.subr.bf16.mxu1 %v1888_v32  ;;  %v1943_v32 = vld [vmem:[#allocation7 + $0x200] ss:$16 sps:$4 sm:$0xff]   ;;  %p2129_p1 = pnand %p2128_p8, %p2548_p0  ;;  %s2133_s10 = scalar_lea.vmem %s2132_s22, 1024 }
  0x87   : > { %p2134_p7 = scmp.lt.s32.totalorder %s2485_s23, %s2132_s22  ;;  %p2135_p9 = scmp.lt.s32.totalorder %s2133_s10, %s2127_s20 }
  0x88   : > { %1269 = vmatpush1.bf16.msra.mxu0 %v1883_v33  ;;  %v1946_v33 = vld [vmem:[#allocation7 + $0x208] ss:$16 sps:$4 sm:$0xff]   ;;  %p2130_p3 = pneg %p2129_p1 }
  0x89   : > { %1270 = vmatprep.subr.bf16.mxu0 %v1891_v34  ;;  %1351 = vmatpush1.bf16.msra.mxu1 %v1886_v35  ;;  %p2136_p12 = por %p2135_p9, %p2134_p7 }
  0x8a   : > { %1352 = vmatprep.subr.bf16.mxu1 %v1894_v36  ;;  %v1951_v36 = vld [vmem:[#allocation7 + $0x224] ss:$16 sps:$4 sm:$0xff]  }
  0x8b   : > { %p2137_p2 = pnand %p2136_p12, %p2130_p3 }
  0x8c   : > { %1271 = vmatpush1.bf16.msra.mxu0 %v1889_v37  ;;  %v1954_v37 = vld [vmem:[#allocation7 + $0x22c] ss:$16 sps:$4 sm:$0xff]  }
  0x8d   : > { %1272 = vmatprep.subr.bf16.mxu0 %v1897_v38  ;;  %1353 = vmatpush1.bf16.msra.mxu1 %v1892_v39  ;;  %v1949_v39 = vld [vmem:[#allocation7 + $0x220] ss:$16 sps:$4 sm:$0xff]  }
  0x8e   : > { %1354 = vmatprep.subr.bf16.mxu1 %v1900_v40  ;;  %v1952_v40 = vld [vmem:[#allocation7 + $0x228] ss:$16 sps:$4 sm:$0xff]  }
  0x90   : > { %1273 = vmatpush1.bf16.msra.mxu0 %v1895_v41  ;;  %v1957_v41 = vld [vmem:[#allocation7 + $0x244] ss:$16 sps:$4 sm:$0xff]  }
  0x91   : > { %1274 = vmatprep.subr.bf16.mxu0 %v1903_v42  ;;  %1355 = vmatpush1.bf16.msra.mxu1 %v1898_v43  ;;  %v1960_v42 = vld [vmem:[#allocation7 + $0x24c] ss:$16 sps:$4 sm:$0xff]   ;;  %v1955_v43 = vld [vmem:[#allocation7 + $0x240] ss:$16 sps:$4 sm:$0xff]  }
  0x92   : > { %1356 = vmatprep.subr.bf16.mxu1 %v1906_v45  ;;  %v1963_v45 = vld [vmem:[#allocation7 + $0x264] ss:$16 sps:$4 sm:$0xff]  }
  0x94   : > { %1275 = vmatpush1.bf16.msra.mxu0 %v1901_v44  ;;  %v1958_v44 = vld [vmem:[#allocation7 + $0x248] ss:$16 sps:$4 sm:$0xff]  }
  0x95   : > { %1276 = vmatprep.subr.bf16.mxu0 %v1909_v47  ;;  %1357 = vmatpush1.bf16.msra.mxu1 %v1904_v46  ;;  %v1966_v46 = vld [vmem:[#allocation7 + $0x26c] ss:$16 sps:$4 sm:$0xff]   ;;  %v1961_v47 = vld [vmem:[#allocation7 + $0x260] ss:$16 sps:$4 sm:$0xff]  }
  0x96   : > { %1358 = vmatprep.subr.bf16.mxu1 %v1912_v48  ;;  %v1964_v48 = vld [vmem:[#allocation7 + $0x268] ss:$16 sps:$4 sm:$0xff]  }
  0x98   : > { %1277 = vmatpush1.bf16.msra.mxu0 %v1907_v49  ;;  %v1969_v49 = vld [vmem:[#allocation7 + $0x284] ss:$16 sps:$4 sm:$0xff]  }
  0x99   : > { %1278 = vmatprep.subr.bf16.mxu0 %v1915_v50  ;;  %1359 = vmatpush1.bf16.msra.mxu1 %v1910_v51  ;;  %v1972_v50 = vld [vmem:[#allocation7 + $0x28c] ss:$16 sps:$4 sm:$0xff]   ;;  %v1967_v51 = vld [vmem:[#allocation7 + $0x280] ss:$16 sps:$4 sm:$0xff]  }
  0x9a   : > { %1360 = vmatprep.subr.bf16.mxu1 %v1918_v52  ;;  %v1970_v52 = vld [vmem:[#allocation7 + $0x288] ss:$16 sps:$4 sm:$0xff]  }
  0x9c   : > { %1279 = vmatpush1.bf16.msra.mxu0 %v1913_v53  ;;  %v1975_v53 = vld [vmem:[#allocation7 + $0x2a4] ss:$16 sps:$4 sm:$0xff]  }
  0x9d   : > { %1280 = vmatprep.subr.bf16.mxu0 %v1921_v54  ;;  %1361 = vmatpush1.bf16.msra.mxu1 %v1916_v55  ;;  %v1978_v54 = vld [vmem:[#allocation7 + $0x2ac] ss:$16 sps:$4 sm:$0xff]   ;;  %v1973_v55 = vld [vmem:[#allocation7 + $0x2a0] ss:$16 sps:$4 sm:$0xff]  }
  0x9e   : > { %1362 = vmatprep.subr.bf16.mxu1 %v1924_v56  ;;  %v1976_v56 = vld [vmem:[#allocation7 + $0x2a8] ss:$16 sps:$4 sm:$0xff]  }
  0xa0   : > { %1281 = vmatpush1.bf16.msra.mxu0 %v1919_v57  ;;  %v1981_v57 = vld [vmem:[#allocation7 + $0x2c4] ss:$16 sps:$4 sm:$0xff]  }
  0xa1   : > { %1282 = vmatprep.subr.bf16.mxu0 %v1927_v58  ;;  %1363 = vmatpush1.bf16.msra.mxu1 %v1922_v59  ;;  %v1984_v58 = vld [vmem:[#allocation7 + $0x2cc] ss:$16 sps:$4 sm:$0xff]   ;;  %v1979_v59 = vld [vmem:[#allocation7 + $0x2c0] ss:$16 sps:$4 sm:$0xff]  }
  0xa2   : > { %1364 = vmatprep.subr.bf16.mxu1 %v1930_v60  ;;  %v1982_v60 = vld [vmem:[#allocation7 + $0x2c8] ss:$16 sps:$4 sm:$0xff]  }
  0xa4   : > { %1283 = vmatpush1.bf16.msra.mxu0 %v1925_v61  ;;  %v1987_v61 = vld [vmem:[#allocation7 + $0x2e4] ss:$16 sps:$4 sm:$0xff]  }
  0xa5   : > { %1365 = vmatpush1.bf16.msra.mxu1 %v1928_v62  ;;  %1284 = vmatprep.subr.bf16.mxu0 %v1933_v63  ;;  %v1990_v62 = vld [vmem:[#allocation7 + $0x2ec] ss:$16 sps:$4 sm:$0xff]   ;;  %v1985_v63 = vld [vmem:[#allocation7 + $0x2e0] ss:$16 sps:$4 sm:$0xff]  }
  0xa6   : > { %1366 = vmatprep.subr.bf16.mxu1 %v1936_v0  ;;  %v1988_v0 = vld [vmem:[#allocation7 + $0x2e8] ss:$16 sps:$4 sm:$0xff]  }
  0xa8   : > { %1285 = vmatpush1.bf16.msra.mxu0 %v1931_v1  ;;  %v1993_v1 = vld [vmem:[#allocation7 + $0x304] ss:$16 sps:$4 sm:$0xff]  }
  0xa9   : > { %1367 = vmatpush1.bf16.msra.mxu1 %v1934_v2  ;;  %1286 = vmatprep.subr.bf16.mxu0 %v1939_v3  ;;  %v1996_v2 = vld [vmem:[#allocation7 + $0x30c] ss:$16 sps:$4 sm:$0xff]   ;;  %v1991_v3 = vld [vmem:[#allocation7 + $0x300] ss:$16 sps:$4 sm:$0xff]  }
  0xaa   : > { %1368 = vmatprep.subr.bf16.mxu1 %v1942_v4  ;;  %v1994_v4 = vld [vmem:[#allocation7 + $0x308] ss:$16 sps:$4 sm:$0xff]  }
  0xac   : > { %1287 = vmatpush1.bf16.msra.mxu0 %v1937_v5  ;;  %v1999_v5 = vld [vmem:[#allocation7 + $0x324] ss:$16 sps:$4 sm:$0xff]  }
  0xad   : > { %1369 = vmatpush1.bf16.msra.mxu1 %v1940_v6  ;;  %1297 = vmatprep.subr.bf16.mxu0 %v1945_v7  ;;  %v2002_v6 = vld [vmem:[#allocation7 + $0x32c] ss:$16 sps:$4 sm:$0xff]   ;;  %v1997_v7 = vld [vmem:[#allocation7 + $0x320] ss:$16 sps:$4 sm:$0xff]  }
  0xae   : > { %1379 = vmatprep.subr.bf16.mxu1 %v1948_v8  ;;  %v2000_v8 = vld [vmem:[#allocation7 + $0x328] ss:$16 sps:$4 sm:$0xff]  }
 0x142   : > { %v410_v17 = vpop.f32.mrb[0].mxu0 }
 0x143   : > { %v411_v19 = vadd.f32 %v410_v17, %v335_v15  ;;  %v412_v20 = vpop.f32.mrb[1].mxu0  ;;  %v2449_v23 = vpop.f32.mrb[0].mxu1  ;;  %v2008_v15 = vld [vmem:[#allocation7 + $0x34c] ss:$16 sps:$4 sm:$0xff]   ;;  %v2006_v17 = vld [vmem:[#allocation7 + $0x348] ss:$16 sps:$4 sm:$0xff]  }
 0x144   : > { %v413_v21 = vadd.f32 %v412_v20, %v339_v16  ;;  %v414_v22 = vpop.f32.mrb[2].mxu0  ;;  %v453_v26 = vpop.f32.mrb[1].mxu1  ;;  %v2003_v16 = vld [vmem:[#allocation7 + $0x340] ss:$16 sps:$4 sm:$0xff]  }
 0x145   : > { %v458_v24 = vmax.f32 %v411_v19, 0.0  ;;  %v415_v25 = vpop.f32.mrb[3].mxu0  ;;  %v454_v28 = vadd.f32 %v453_v26, %v347_v18  ;;  %v455_v29 = vpop.f32.mrb[2].mxu1  ;;  %v2011_v18 = vld [vmem:[#allocation7 + $0x364] ss:$16 sps:$4 sm:$0xff]  }
 0x146   : > { %v459_v27 = vmax.f32 %v413_v21, 0.0  ;;  %v456_v30 = vpop.f32.mrb[3].mxu1  ;;  %v2014_v19 = vld [vmem:[#allocation7 + $0x36c] ss:$16 sps:$4 sm:$0xff]   ;;  %v2009_v20 = vld [vmem:[#allocation7 + $0x360] ss:$16 sps:$4 sm:$0xff]  }
 0x147   : > { %v461_v34 = vmax.f32 %v454_v28, 0.0  ;;  %v590_v35 = vpack.c.bf16 %v458_v24, %v458_v24  ;;  %v2012_v21 = vld [vmem:[#allocation7 + $0x368] ss:$16 sps:$4 sm:$0xff]   ;;  %v2017_v22 = vld [vmem:[#allocation7 + $0x384] ss:$16 sps:$4 sm:$0xff]  }
 0x148   : > { %v591_v31 = vpack.c.bf16 %v459_v27, %v459_v27  ;;  %v2020_v24 = vld [vmem:[#allocation7 + $0x38c] ss:$16 sps:$4 sm:$0xff]   ;;  %v2015_v25 = vld [vmem:[#allocation7 + $0x380] ss:$16 sps:$4 sm:$0xff]   ;;  %v2018_v26 = vld [vmem:[#allocation7 + $0x388] ss:$16 sps:$4 sm:$0xff]  }
 0x149   : > { %v593_v38 = vpack.c.bf16 %v461_v34, %v461_v34  ;;  %v2452_v27 = vsub.s32 2, %v2427_v10  ;;  %v2023_v28 = vld [vmem:[#allocation7 + $0x3a4] ss:$16 sps:$4 sm:$0xff]   ;;  %v2026_v29 = vld [vmem:[#allocation7 + $0x3ac] ss:$16 sps:$4 sm:$0xff]  }
 0x14a   : > { %1288 = vmatprep.mubr.bf16.mxu0 %v591_v31  ;;  %1370 = vmatprep.mubr.bf16.mxu1 %v591_v31  ;;  %v2021_v30 = vld [vmem:[#allocation7 + $0x3a0] ss:$16 sps:$4 sm:$0xff]   ;;  %v2024_v31 = vld [vmem:[#allocation7 + $0x3a8] ss:$16 sps:$4 sm:$0xff]   ;;  %v2032_v34 = vld [vmem:[#allocation7 + $0x3cc] ss:$16 sps:$4 sm:$0xff]  }
 0x14b   : > { %1289 = vmatmul.mubr.bf16.vlgmr.msra.gmra.mrb[4].mxu0 %v590_v35  ;;  %1371 = vmatmul.mubr.bf16.vlgmr.msra.gmra.mrb[4].mxu1 %v590_v35  ;;  %v2027_v35 = vld [vmem:[#allocation7 + $0x3c0] ss:$16 sps:$4 sm:$0xff]  }
 0x14c   : > { %1298 = vmatpush1.bf16.msra.mxu0 %v1943_v32  ;;  %1380 = vmatpush1.bf16.msra.mxu1 %v1946_v33  ;;  %v343_v32 = vrot.slane %v2435_v12, %v2452_v27  ;;  %v2029_v33 = vld [vmem:[#allocation7 + $0x3c4] ss:$16 sps:$4 sm:$0xff]  }
 0x14d   : > { %1299 = vmatprep.subr.bf16.mxu0 %v1951_v36  ;;  %1381 = vmatprep.subr.bf16.mxu1 %v1954_v37  ;;  %v2030_v36 = vld [vmem:[#allocation7 + $0x3c8] ss:$16 sps:$4 sm:$0xff]   ;;  %v2035_v37 = vld [vmem:[#allocation7 + $0x3e4] ss:$16 sps:$4 sm:$0xff]  }
 0x14e   : > { %1329 = vmatprep.mubr.bf16.mxu0 %v593_v38  ;;  %1411 = vmatprep.mubr.bf16.mxu1 %v593_v38  ;;  %v452_v10 = vadd.f32 %v2449_v23, %v343_v32  ;;  %v2038_v38 = vld [vmem:[#allocation7 + $0x3ec] ss:$16 sps:$4 sm:$0xff]   ;;  %v594_v23 = vld [vmem:[%s2531_s4] sm:$0xf] }
 0x150   : > { %1300 = vmatpush1.bf16.msra.mxu0 %v1949_v39  ;;  %1382 = vmatpush1.bf16.msra.mxu1 %v1952_v40  ;;  %v2033_v39 = vld [vmem:[#allocation7 + $0x3e0] ss:$16 sps:$4 sm:$0xff]   ;;  %v2036_v40 = vld [vmem:[#allocation7 + $0x3e8] ss:$16 sps:$4 sm:$0xff]  }
 0x151   : > { %1301 = vmatprep.subr.bf16.mxu0 %v1957_v41  ;;  %1383 = vmatprep.subr.bf16.mxu1 %v1960_v42  ;;  %v460_v41 = vmax.f32 %v452_v10, 0.0  ;;  %v599_v42 = vrot.slane %v594_v23, %v2430_v11 }
 0x153   : > { %v592_v12 = vpack.c.bf16 %v460_v41, %v460_v41 }
 0x154   : > { %1302 = vmatpush1.bf16.msra.mxu0 %v1955_v43  ;;  %1384 = vmatpush1.bf16.msra.mxu1 %v1958_v44  ;;  %v603_v43 = vrot.slane %v594_v23, %v2438_v13 }
 0x155   : > { %1303 = vmatprep.subr.bf16.mxu0 %v1963_v45  ;;  %1385 = vmatprep.subr.bf16.mxu1 %v1966_v46  ;;  %v607_v45 = vrot.slane %v594_v23, %v2452_v27 }
 0x158   : > { %1304 = vmatpush1.bf16.msra.mxu0 %v1961_v47  ;;  %1386 = vmatpush1.bf16.msra.mxu1 %v1964_v48 }
 0x159   : > { %1305 = vmatprep.subr.bf16.mxu0 %v1969_v49  ;;  %1387 = vmatprep.subr.bf16.mxu1 %v1972_v50 }
 0x15c   : > { %1306 = vmatpush1.bf16.msra.mxu0 %v1967_v51  ;;  %1388 = vmatpush1.bf16.msra.mxu1 %v1970_v52  ;;  %v611_v51 = vrot.slane %v594_v23, %v2441_v14 }
 0x15d   : > { %1307 = vmatprep.subr.bf16.mxu0 %v1975_v53  ;;  %1389 = vmatprep.subr.bf16.mxu1 %v1978_v54 }
 0x160   : > { %1308 = vmatpush1.bf16.msra.mxu0 %v1973_v55  ;;  %1390 = vmatpush1.bf16.msra.mxu1 %v1976_v56 }
 0x161   : > { %1309 = vmatprep.subr.bf16.mxu0 %v1981_v57  ;;  %1391 = vmatprep.subr.bf16.mxu1 %v1984_v58 }
 0x164   : > { %1310 = vmatpush1.bf16.msra.mxu0 %v1979_v59  ;;  %1392 = vmatpush1.bf16.msra.mxu1 %v1982_v60 }
 0x165   : > { %1311 = vmatprep.subr.bf16.mxu0 %v1987_v61  ;;  %1393 = vmatprep.subr.bf16.mxu1 %v1990_v62 }
 0x168   : > { %1312 = vmatpush1.bf16.msra.mxu0 %v1985_v63  ;;  %1394 = vmatpush1.bf16.msra.mxu1 %v1988_v0 }
 0x169   : > { %1313 = vmatprep.subr.bf16.mxu0 %v1993_v1  ;;  %1395 = vmatprep.subr.bf16.mxu1 %v1996_v2 }
 0x16c   : > { %1314 = vmatpush1.bf16.msra.mxu0 %v1991_v3  ;;  %1396 = vmatpush1.bf16.msra.mxu1 %v1994_v4 }
 0x16d   : > { %1315 = vmatprep.subr.bf16.mxu0 %v1999_v5  ;;  %1397 = vmatprep.subr.bf16.mxu1 %v2002_v6 }
 0x170   : > { %1316 = vmatpush1.bf16.msra.mxu0 %v1997_v7  ;;  %1398 = vmatpush1.bf16.msra.mxu1 %v2000_v8 }
 0x171   : > { %1317 = vmatprep.subr.bf16.mxu0 %v2005_v9  ;;  %1399 = vmatprep.subr.bf16.mxu1 %v2008_v15 }
 0x174   : > { %1318 = vmatpush1.bf16.msra.mxu0 %v2003_v16  ;;  %1400 = vmatpush1.bf16.msra.mxu1 %v2006_v17 }
 0x175   : > { %1319 = vmatprep.subr.bf16.mxu0 %v2011_v18  ;;  %1401 = vmatprep.subr.bf16.mxu1 %v2014_v19  ;;  %v1447_v18 = vld [vmem:[%s2532_s5] sm:$0xf] }
 0x176   : > { %v1473_v19 = vld [vmem:[%s2533_s6] sm:$0xf] }
 0x178   : > { %1320 = vmatpush1.bf16.msra.mxu0 %v2009_v20  ;;  %1402 = vmatpush1.bf16.msra.mxu1 %v2012_v21  ;;  %v1452_v20 = vrot.slane %v1447_v18, %v2430_v11  ;;  %v1456_v21 = vrot.slane %v1447_v18, %v2438_v13 }
 0x179   : > { %1321 = vmatprep.subr.bf16.mxu0 %v2017_v22  ;;  %1403 = vmatprep.subr.bf16.mxu1 %v2020_v24  ;;  %v1460_v22 = vrot.slane %v1447_v18, %v2452_v27  ;;  %v1464_v24 = vrot.slane %v1447_v18, %v2441_v14 }
 0x17c   : > { %1322 = vmatpush1.bf16.msra.mxu0 %v2015_v25  ;;  %1404 = vmatpush1.bf16.msra.mxu1 %v2018_v26  ;;  %v1478_v26 = vrot.slane %v1473_v19, %v2430_v11 }
 0x17d   : > { %1323 = vmatprep.subr.bf16.mxu0 %v2023_v28  ;;  %1405 = vmatprep.subr.bf16.mxu1 %v2026_v29  ;;  %v1482_v28 = vrot.slane %v1473_v19, %v2438_v13  ;;  %v1486_v29 = vrot.slane %v1473_v19, %v2452_v27 }
 0x180   : > { %1324 = vmatpush1.bf16.msra.mxu0 %v2021_v30  ;;  %1406 = vmatpush1.bf16.msra.mxu1 %v2024_v31  ;;  %v1490_v30 = vrot.slane %v1473_v19, %v2441_v14 }
 0x181   : > { %1325 = vmatprep.subr.bf16.mxu0 %v2029_v33  ;;  %1407 = vmatprep.subr.bf16.mxu1 %v2032_v34 }
 0x184   : > { %1326 = vmatpush1.bf16.msra.mxu0 %v2027_v35  ;;  %1408 = vmatpush1.bf16.msra.mxu1 %v2030_v36 }
 0x185   : > { %1327 = vmatprep.subr.bf16.mxu0 %v2035_v37  ;;  %1409 = vmatprep.subr.bf16.mxu1 %v2038_v38 }
 0x188   : > { %1328 = vmatpush1.bf16.msra.mxu0 %v2033_v39  ;;  %1410 = vmatpush1.bf16.msra.mxu1 %v2036_v40 }
 0x18b   : > { %1330 = vmatmul.mubr.bf16.vlgmr.msra.gmra.mrb[4].mxu0 %v592_v12  ;;  %1412 = vmatmul.mubr.bf16.vlgmr.msra.gmra.mrb[4].mxu1 %v592_v12 }
 0x25e   : > { %v1331_v44 = vpop.f32.mrb[4].mxu0  ;;  %v1413_v46 = vpop.f32.mrb[4].mxu1 }
 0x25f   : > { %v1759_v47 = vadd.f32 %v1331_v44, %v599_v42  ;;  %v1333_v48 = vpop.f32.mrb[5].mxu0  ;;  %v1415_v49 = vpop.f32.mrb[5].mxu1  ;;  %v1761_v56 = vadd.f32 %v1413_v46, %v607_v45 }
 0x260   : > { %v1760_v50 = vadd.f32 %v1333_v48, %v603_v43  ;;  %v1335_v52 = vpop.f32.mrb[6].mxu0  ;;  %v1417_v53 = vpop.f32.mrb[6].mxu1  ;;  %v1762_v58 = vadd.f32 %v1415_v49, %v611_v51 }
 0x261   : > { %v1336_v54 = vpop.f32.mrb[7].mxu0  ;;  %v1418_v55 = vpop.f32.mrb[7].mxu1 }
 0x262   : > { %v1420_v57 = vadd.f32 %v1760_v50, %v1759_v47 }
 0x264   : > { %v1421_v59 = vadd.f32 %v1761_v56, %v1420_v57 }
 0x266   : > { %v1422_v60 = vadd.f32 %v1762_v58, %v1421_v59 }
 0x268   : > { %1423 = vadd.xlane.f32.xlu0 %v1422_v60 }
 0x2f5   : > { %v1424_v61 = vpop.xlane.xlu0 %1423 }
 0x2f6   : > { %v1426_v62 = vmul.f32 0.001953125, %v1424_v61 }
 0x2f8   : > { %v1427_v63 = vsub.f32 %v1759_v47, %v1426_v62  ;;  %v1428_v0 = vsub.f32 %v1760_v50, %v1426_v62  ;;  %v1429_v1 = vsub.f32 %v1761_v56, %v1426_v62  ;;  %v1430_v2 = vsub.f32 %v1762_v58, %v1426_v62 }
 0x2fa   : > { %v1431_v3 = vmul.f32 %v1427_v63, %v1427_v63  ;;  %v1432_v4 = vmul.f32 %v1428_v0, %v1428_v0  ;;  %v1433_v5 = vmul.f32 %v1429_v1, %v1429_v1  ;;  %v1434_v7 = vmul.f32 %v1430_v2, %v1430_v2 }
 0x2fc   : > { %v1435_v6 = vadd.f32 %v1432_v4, %v1431_v3 }
 0x2fe   : > { %v1436_v8 = vadd.f32 %v1435_v6, %v1433_v5 }
 0x300   : > { %v1437_v9 = vadd.f32 %v1436_v8, %v1434_v7 }
 0x302   : > { %1438 = vadd.xlane.f32.xlu0 %v1437_v9 }
 0x38f   : > { %v1439_v15 = vpop.xlane.xlu0 %1438 }
 0x390   : > { %v1440_v16 = vmul.f32 0.001953125, %v1439_v15 }
 0x392   : > { %v1441_v17 = vadd.f32 1e-05, %v1440_v16 }
 0x394   : > { %2039 = vrsqrt.f32 %v1441_v17 }
 0x39e   : > { %v2040_v25 = vpop.eup %2039 }
 0x39f   : > { %v1443_v31 = vmul.f32 %v2040_v25, %v1427_v63  ;;  %v1444_v32 = vmul.f32 %v2040_v25, %v1428_v0  ;;  %v1445_v33 = vmul.f32 %v2040_v25, %v1429_v1  ;;  %v1446_v34 = vmul.f32 %v2040_v25, %v1430_v2 }
 0x3a1   : > { %v1469_v35 = vmul.f32 %v1452_v20, %v1443_v31  ;;  %v1470_v36 = vmul.f32 %v1456_v21, %v1444_v32  ;;  %v1471_v10 = vmul.f32 %v1460_v22, %v1445_v33  ;;  %v1472_v37 = vmul.f32 %v1464_v24, %v1446_v34 }
 0x3a3   : > { %v1495_v11 = vadd.f32 %v1478_v26, %v1469_v35  ;;  %v1496_v38 = vadd.f32 %v1482_v28, %v1470_v36  ;;  %v1497_v13 = vadd.f32 %v1486_v29, %v1471_v10  ;;  %v1498_v39 = vadd.f32 %v1490_v30, %v1472_v37 }
 0x3a5   : > { %1499 = vst [vmem:[%s322_s14] sm:$0xff] %v1495_v11  ;;  %1500 = vst [vmem:[%s322_s14 + $0x8] sm:$0xff] %v1496_v38 }
 0x3a6   : > { %1501 = vst [vmem:[%s322_s14 + $0x10] sm:$0xff] %v1497_v13  ;;  %1502 = vst [vmem:[%s322_s14 + $0x18] sm:$0xff] %v1498_v39 }
 0x3a7   : > { %2140 = shalt.err (!%p2137_p2)
}
 0x3a8   : > { %s2141_s12 = scalar_lea.hbm %s2483_s9, 512  ;;  %s2145_s15 = scalar_lea.hbm %s2534_s7, 1024 }
 0x3a9   : > { %p2142_p13 = scmp.ne.s32.totalorder %s2483_s9, %s2141_s12  ;;  %p2146_p4 = scmp.lt.u32.totalorder %s2483_s9, %s2534_s7 }
 0x3aa   : > { %p2147_p5 = scmp.lt.u32.totalorder %s2145_s15, %s2141_s12  ;;  %p2149_p8 = scmp.lt.u32.totalorder %s2141_s12, %s2483_s9 }
 0x3ab   : > { %p2143_p6 = pnand %p2142_p13, %p2548_p0 }
 0x3ac   : > { %p2148_p11 = por %p2147_p5, %p2146_p4 }
 0x3ad   : > { %p2144_p10 = pneg %p2143_p6 }
 0x3ae   : > { %p2150_p1 = por %p2149_p8, %p2148_p11 }
 0x3b0   : > { %p2151_p3 = pnand %p2150_p1, %p2144_p10 }
 0x3b2   : > { %2154 = shalt.err (!%p2151_p3)
}
 0x3b3   : > { %1781 = dma.vmem_to_hbm [thread:$0]  (%p2548_p0), %s2485_s23, 512, %s2483_s9, %s1504_s28  }
 0x3b4 PF: > { %s1530_s29 = sand.u32 1, %s2185_s24   ;;  %p2549_p7 = scmp.ne.s32.totalorder %s2539_s8, 0 }
 0x3b5   : > { %p2550_p9 = scmp.ge.s32.totalorder %s2197_s27, 2  ;;  %s1531_s30 = scalar_lea.sflag [#allocation4], %s1530_s29 }
 0x3b7   : > { %p1795_p12 = pnand %p2550_p9, %p2549_p7 }
 0x3b9   : > { %2180 = dma.done.wait (!%p1795_p12), %s1531_s30, 512  }
 0x3ba   : > { %2182 = vsyncadd (!%p1795_p12), %s1531_s30, 4294966784  ;;  %p21_p2 = scmp.ge.s32.totalorder %s2356_s13, 4   ;;  %s2551_s24 = smov %s2189_s25 }
 0x3bb   : > { %s2552_s25 = smov %s2193_s26  ;;  %s2553_s26 = smov %s2372_s17 }
 0x3bc   : > { %s2554_s27 = smov %s2356_s13  ;;  %23 = sbr.rel (!%p21_p2) target bundleno = 6 (0x6), region = 101 }
 0x3c3   :  { %1536 = vsyncpa [#allocation3], 1 }
 0x3c4   :  { %1538 = vsyncpa [#allocation3 + $0x1], 1 }
 0x3c5   :  { %1539 = vsyncpa [#allocation6], 1 }
 0x3c6   :  { %1540 = vsyncpa [#allocation4], 1 }
 0x3c7   :  { %1542 = vsyncpa [#allocation4 + $0x1], 1 }

</bundles_post_ra>
